<compile_context>
chip_gen: v5e
topology: v5e:2x2
jax: 0.10.0
libtpu: 0.0.40
codegen_flags: <defaults>
</compile_context>

<pallas_src>
import jax
import jax.numpy as jnp
from jax import lax
from jax.experimental import pallas as pl
from jax.experimental.pallas import tpu as pltpu


def _default_epilogue_dtype():
    """bf16 epilogues on v6e/v7x (bf16 VPU); f32 elsewhere (v5e has no bf16 VPU)."""
    try:
        kind = jax.devices()[0].device_kind.lower()
    except Exception:
        return jnp.float32
    return jnp.bfloat16 if ("v6" in kind or "v7" in kind) else jnp.float32


def _critic_kernel(x_ref, w1_ref, b1_ref, w2_ref, b2_ref, w3_ref, o_ref):
    """One batch tile of the Critic forward pass.

    h1 = relu(x @ W1 + b1)        -- x = [state, action] pre-concatenated (K=8)
    h2 = relu(h1 @ W2 + b2)
    v  = w3 . h2 (contract over H) -- lane-dense (1, TB) row, no transpose
    (b3 is added in the wrapper.)
    """
    cd = w1_ref.dtype   # MXU matmul dtype (bf16); accumulation stays f32
    ed = b1_ref.dtype   # epilogue dtype (bf16 on v6e/v7x, f32 on v5e)

    h1 = jnp.dot(x_ref[...].astype(cd), w1_ref[...],
                 preferred_element_type=jnp.float32)
    h1 = jnp.maximum(h1.astype(ed) + b1_ref[...], 0).astype(cd)

    h2 = jnp.dot(h1, w2_ref[...], preferred_element_type=jnp.float32)
    h2 = jnp.maximum(h2.astype(ed) + b2_ref[...], 0).astype(cd)

    # (1, H) x (TB, H) contracted over H -> (1, TB): full-lane-width writeback
    # without materializing h2.T, and a single bf16 MXU pass (not emulated f32).
    o_ref[...] = lax.dot_general(
        w3_ref[...], h2,
        dimension_numbers=(((1,), (1,)), ((), ())),
        preferred_element_type=jnp.float32)


def _choose_tile(B, block_b):
    """Batch tile size.

    - tiny batches: one sublane-aligned tile
    - B in [64, 256): one 128-aligned tile (unmasked 128-lane stores on v5e)
    - B >= 256: at least two 128-aligned tiles (both v7x TensorCores busy),
      each as large as possible (capped at block_b) to amortize the
      ~0.35us/step grid overhead.
    """
    if B < 64:
        return pl.cdiv(B, 8) * 8
    if B < 256:
        return pl.cdiv(B, 128) * 128
    half = pl.cdiv(B, 2)
    return min(pl.cdiv(half, 128) * 128, block_b)


def critic_forward(state, action, params, *, block_b=2048):
    """Pallas implementation of Critic.forward.

    state:  (B, state_dim) f32
    action: (B, action_dim) f32
    params: output of prepare_critic_params (pre-cast, kernel-ready)
    returns (B, 1) f32
    """
    B = state.shape[0]
    state_dim = state.shape[-1]
    action_dim = action.shape[-1]
    in_dim = state_dim + action_dim
    H = params["w2"].shape[0]

    # torch.cat fused here once; (B, in_dim) is tiny and feeds one K=8 matmul.
    x = jnp.concatenate(
        [state.astype(jnp.float32), action.astype(jnp.float32)], axis=-1)

    TB = _choose_tile(B, block_b)
    B_pad = pl.cdiv(B, TB) * TB
    num_tiles = B_pad // TB
    if B_pad != B:
        x = jnp.pad(x, ((0, B_pad - B), (0, 0)))

    # Explicit VMEM headroom (v7x is the tightest at 64 MiB): double-buffered
    # input tiles + resident bf16 weights + f32 activation temps.  At TB=2048
    # this is ~4-5 MiB, so grid-step overhead -- not VMEM -- is the binding
    # resource; don't re-tighten TB for VMEM.
    approx_vmem = (2 * TB * in_dim * 4                     # x tiles (f32, x2 buf)
                   + (in_dim * H + H * H + 3 * H) * 2      # resident bf16 params
                   + 2 * TB * H * 4                        # h1/h2 temps (f32 worst)
                   + 2 * TB * 4)                           # output row (x2 buf)
    assert approx_vmem < 48 * 1024 * 1024, approx_vmem

    resident = lambda shape: pl.BlockSpec(shape, lambda i: (0, 0))  # VMEM-resident

    out = pl.pallas_call(
        _critic_kernel,
        out_shape=jax.ShapeDtypeStruct((1, B_pad), jnp.float32),
        grid=(num_tiles,),
        in_specs=[
            pl.BlockSpec((TB, in_dim), lambda i: (i, 0)),  # [state, action] rows
            resident((in_dim, H)),       # W1 (stacked, K = state_dim + action_dim)
            resident((1, H)),            # b1 (epilogue dtype)
            resident((H, H)),            # W2
            resident((1, H)),            # b2 (epilogue dtype)
            resident((1, H)),            # w3 row (bf16)
        ],
        out_specs=pl.BlockSpec((1, TB), lambda i: (0, i)),
        compiler_params=pltpu.CompilerParams(
            dimension_semantics=("parallel",)),
    )(x, params["w1"], params["b1"], params["w2"], params["b2"], params["w3"])

    # (1, B_pad) lane-dense row -> (B, 1) column; scalar b3 added here (f32).
    return out.reshape(-1)[:B].reshape(B, 1) + params["b3"]


def init_critic_params(key, state_dim, action_dim, hidden=128, init_w=0.003):
    """f32 parameters mirroring the PyTorch module's shapes/init scheme."""
    in_dim = state_dim + action_dim
    k = jax.random.split(key, 6)
    lim1 = 1.0 / float(in_dim) ** 0.5     # nn.Linear default: U(-1/sqrt(fan_in), .)
    lim2 = 1.0 / float(hidden) ** 0.5
    return {
        "w1": jax.random.uniform(k[0], (in_dim, hidden), jnp.float32, -lim1, lim1),
        "b1": jax.random.uniform(k[1], (hidden,), jnp.float32, -lim1, lim1),
        "w2": jax.random.uniform(k[2], (hidden, hidden), jnp.float32, -lim2, lim2),
        "b2": jax.random.uniform(k[3], (hidden,), jnp.float32, -lim2, lim2),
        # out layer kept in torch layout (out_features, in_features) = (1, H)
        "w3": jax.random.uniform(k[4], (1, hidden), jnp.float32, -init_w, init_w),
        "b3": jax.random.uniform(k[5], (1,), jnp.float32, -init_w, init_w),
    }


def prepare_critic_params(raw, *, compute_dtype=jnp.bfloat16, epilogue_dtype=None):
    """Cast/reshape once (outside the hot RL loop) into the kernel-ready layout."""
    if epilogue_dtype is None:
        epilogue_dtype = _default_epilogue_dtype()
    cd, ed = compute_dtype, epilogue_dtype
    return {
        "w1": raw["w1"].astype(cd),                      # (in_dim, H) bf16
        "b1": raw["b1"].reshape(1, -1).astype(ed),       # (1, H)
        "w2": raw["w2"].astype(cd),                      # (H, H) bf16
        "b2": raw["b2"].reshape(1, -1).astype(ed),       # (1, H)
        "w3": raw["w3"].reshape(1, -1).astype(cd),       # (1, H) bf16
        "b3": raw["b3"].reshape(()).astype(jnp.float32), # scalar, added in wrapper
    }


def _reference(state, action, params):
    """Pure-JAX reference using the exact same dtype recipe as the kernel."""
    cd = params["w1"].dtype
    ed = params["b1"].dtype
    x = jnp.concatenate(
        [state.astype(jnp.float32), action.astype(jnp.float32)], axis=-1)
    h1 = jnp.dot(x.astype(cd), params["w1"], preferred_element_type=jnp.float32)
    h1 = jnp.maximum(h1.astype(ed) + params["b1"], 0).astype(cd)
    h2 = jnp.dot(h1, params["w2"], preferred_element_type=jnp.float32)
    h2 = jnp.maximum(h2.astype(ed) + params["b2"], 0).astype(cd)
    v = jnp.dot(h2, params["w3"].T, preferred_element_type=jnp.float32)
    return v + params["b3"]


if __name__ == "__main__":
    key = jax.random.PRNGKey(0)
    k_params, k_data = jax.random.split(key)

    state_dim, action_dim = 6, 2
    raw_params = init_critic_params(k_params, state_dim, action_dim)
    params = prepare_critic_params(raw_params)   # cast once, reused every call

    # batches: tiny single tile, 128-aligned single tile, two-tile (v7x 2 TCs).
    for batch in [8, 200, 1024]:
        ks, ka = jax.random.split(jax.random.fold_in(k_data, batch))
        state = jax.random.normal(ks, (batch, state_dim), jnp.float32)
        action = jax.random.normal(ka, (batch, action_dim), jnp.float32)

        value = critic_forward(state, action, params)
        jax.block_until_ready(value)

        ref = _reference(state, action, params)
        assert value.shape == (batch, 1), value.shape
        assert jnp.allclose(value, ref, atol=1e-4, rtol=1e-3), (
            "max abs diff = %g" % float(jnp.max(jnp.abs(value - ref))))

    print("KERNEL_OK")
</pallas_src>

<mosaic_0001>
module attributes {stable_mosaic.version = 11 : i64} {
  func.func @_critic_kernel(%arg0: i32, %arg1: memref<8x8xf32, #tpu.memory_space<vmem>>, %arg2: memref<8x128xbf16, #tpu.memory_space<vmem>>, %arg3: memref<1x128xf32, #tpu.memory_space<vmem>>, %arg4: memref<128x128xbf16, #tpu.memory_space<vmem>>, %arg5: memref<1x128xf32, #tpu.memory_space<vmem>>, %arg6: memref<1x128xbf16, #tpu.memory_space<vmem>>, %arg7: memref<1x8xf32, #tpu.memory_space<vmem>>) attributes {dimension_semantics = [#tpu.dimension_semantics<parallel>], iteration_bounds = array<i64: 1>, scalar_prefetch = 0 : i64, scratch_operands = 0 : i64, tpu.core_type = #tpu.core_type<tc>, window_params = [{transform_indices = @transform_0, window_bounds = array<i64: 8, 8>}, {pipeline_mode = #tpu.pipeline_mode<synchronous>, transform_indices = @transform_1, window_bounds = array<i64: 8, 128>}, {pipeline_mode = #tpu.pipeline_mode<synchronous>, transform_indices = @transform_2, window_bounds = array<i64: 1, 128>}, {pipeline_mode = #tpu.pipeline_mode<synchronous>, transform_indices = @transform_3, window_bounds = array<i64: 128, 128>}, {pipeline_mode = #tpu.pipeline_mode<synchronous>, transform_indices = @transform_4, window_bounds = array<i64: 1, 128>}, {pipeline_mode = #tpu.pipeline_mode<synchronous>, transform_indices = @transform_5, window_bounds = array<i64: 1, 128>}, {transform_indices = @transform_6, window_bounds = array<i64: 1, 8>}]} {
    %c0 = arith.constant 0 : index
    %c0_0 = arith.constant 0 : index
    %0 = vector.load %arg1[%c0, %c0_0] : memref<8x8xf32, #tpu.memory_space<vmem>>, vector<8x8xf32>
    %1 = arith.truncf %0 : vector<8x8xf32> to vector<8x8xbf16>
    %c0_1 = arith.constant 0 : index
    %c0_2 = arith.constant 0 : index
    %2 = vector.load %arg2[%c0_1, %c0_2] : memref<8x128xbf16, #tpu.memory_space<vmem>>, vector<8x128xbf16>
    %cst = arith.constant dense<0.000000e+00> : vector<8x128xf32>
    %3 = tpu.matmul %1, %2, %cst {dimension_numbers = #tpu.dot_dimension_numbers<[1], [0], [0], [1], [0, 0, 1, 1], [], []>} : vector<8x8xbf16>, vector<8x128xbf16>, vector<8x128xf32> -> vector<8x128xf32>
    %c0_3 = arith.constant 0 : index
    %c0_4 = arith.constant 0 : index
    %4 = vector.load %arg3[%c0_3, %c0_4] : memref<1x128xf32, #tpu.memory_space<vmem>>, vector<1x128xf32>
    %5 = vector.broadcast %4 : vector<1x128xf32> to vector<8x128xf32>
    %6 = arith.addf %3, %5 : vector<8x128xf32>
    %cst_5 = arith.constant 0.000000e+00 : f32
    %7 = vector.broadcast %cst_5 : f32 to vector<8x128xf32>
    %8 = arith.maximumf %6, %7 : vector<8x128xf32>
    %9 = arith.truncf %8 : vector<8x128xf32> to vector<8x128xbf16>
    %c0_6 = arith.constant 0 : index
    %c0_7 = arith.constant 0 : index
    %10 = vector.load %arg4[%c0_6, %c0_7] : memref<128x128xbf16, #tpu.memory_space<vmem>>, vector<128x128xbf16>
    %cst_8 = arith.constant dense<0.000000e+00> : vector<8x128xf32>
    %11 = tpu.matmul %9, %10, %cst_8 {dimension_numbers = #tpu.dot_dimension_numbers<[1], [0], [0], [1], [0, 0, 1, 1], [], []>} : vector<8x128xbf16>, vector<128x128xbf16>, vector<8x128xf32> -> vector<8x128xf32>
    %c0_9 = arith.constant 0 : index
    %c0_10 = arith.constant 0 : index
    %12 = vector.load %arg5[%c0_9, %c0_10] : memref<1x128xf32, #tpu.memory_space<vmem>>, vector<1x128xf32>
    %13 = vector.broadcast %12 : vector<1x128xf32> to vector<8x128xf32>
    %14 = arith.addf %11, %13 : vector<8x128xf32>
    %cst_11 = arith.constant 0.000000e+00 : f32
    %15 = vector.broadcast %cst_11 : f32 to vector<8x128xf32>
    %16 = arith.maximumf %14, %15 : vector<8x128xf32>
    %17 = arith.truncf %16 : vector<8x128xf32> to vector<8x128xbf16>
    %c0_12 = arith.constant 0 : index
    %c0_13 = arith.constant 0 : index
    %18 = vector.load %arg6[%c0_12, %c0_13] : memref<1x128xbf16, #tpu.memory_space<vmem>>, vector<1x128xbf16>
    %cst_14 = arith.constant dense<0.000000e+00> : vector<1x8xf32>
    %19 = tpu.matmul %18, %17, %cst_14 {dimension_numbers = #tpu.dot_dimension_numbers<[1], [1], [0], [0], [0, 0, 1, 0], [], []>} : vector<1x128xbf16>, vector<8x128xbf16>, vector<1x8xf32> -> vector<1x8xf32>
    %c0_15 = arith.constant 0 : index
    %c0_16 = arith.constant 0 : index
    %20 = vector.load %arg7[%c0_15, %c0_16] : memref<1x8xf32, #tpu.memory_space<vmem>>, vector<1x8xf32>
    tpu.vector_store %arg7[%c0_15, %c0_16], %19 {strides = array<i32>} : memref<1x8xf32, #tpu.memory_space<vmem>>, vector<1x8xf32>,
    return
  }
  func.func @transform_0(%arg0: i32) -> (i32, i32) {
    %c0_i32 = arith.constant 0 : i32
    %c0_i32_0 = arith.constant 0 : i32
    return %arg0, %c0_i32 : i32, i32
  }
  func.func @transform_1(%arg0: i32) -> (i32, i32) {
    %c0_i32 = arith.constant 0 : i32
    %c0_i32_0 = arith.constant 0 : i32
    %c0_i32_1 = arith.constant 0 : i32
    return %c0_i32, %c0_i32_0 : i32, i32
  }
  func.func @transform_2(%arg0: i32) -> (i32, i32) {
    %c0_i32 = arith.constant 0 : i32
    %c0_i32_0 = arith.constant 0 : i32
    %c0_i32_1 = arith.constant 0 : i32
    return %c0_i32, %c0_i32_0 : i32, i32
  }
  func.func @transform_3(%arg0: i32) -> (i32, i32) {
    %c0_i32 = arith.constant 0 : i32
    %c0_i32_0 = arith.constant 0 : i32
    %c0_i32_1 = arith.constant 0 : i32
    return %c0_i32, %c0_i32_0 : i32, i32
  }
  func.func @transform_4(%arg0: i32) -> (i32, i32) {
    %c0_i32 = arith.constant 0 : i32
    %c0_i32_0 = arith.constant 0 : i32
    %c0_i32_1 = arith.constant 0 : i32
    return %c0_i32, %c0_i32_0 : i32, i32
  }
  func.func @transform_5(%arg0: i32) -> (i32, i32) {
    %c0_i32 = arith.constant 0 : i32
    %c0_i32_0 = arith.constant 0 : i32
    %c0_i32_1 = arith.constant 0 : i32
    return %c0_i32, %c0_i32_0 : i32, i32
  }
  func.func @transform_6(%arg0: i32) -> (i32, i32) {
    %c0_i32 = arith.constant 0 : i32
    %c0_i32_0 = arith.constant 0 : i32
    return %c0_i32, %arg0 : i32, i32
  }
}

</mosaic_0001>

<bundles_post_ra>
// kernel: tpu_custom_call.1
= control target key start
LH: loop header
LB: loop body
LE: loop exit
PB: predicated region body
PF: predicated region fallthrough
CT: control target
= control target key end

     0   :  { %11 = vsyncpa [#allocation3], 0  ;;  %s428_s0 = inlined_call_operand.hbm [shape: f32[8,8], index: 0, kind: input, shape index: {}]   ;;  %s429_s1 = inlined_call_operand.hbm [shape: bf16[8,128], index: 1, kind: input, shape index: {}]   ;;  %s430_s2 = inlined_call_operand.vmem [shape: f32[1,128], index: 2, kind: input, shape index: {}]   ;;  %s431_s3 = inlined_call_operand.hbm [shape: bf16[128,128], index: 3, kind: input, shape index: {}]   ;;  %s432_s4 = inlined_call_operand.vmem [shape: f32[1,128], index: 4, kind: input, shape index: {}]   ;;  %s433_s5 = inlined_call_operand.vmem [shape: bf16[1,128], index: 5, kind: input, shape index: {}]   ;;  %s434_s6 = inlined_call_operand.hbm [shape: f32[1,8], index: 6, kind: output, shape index: {}]  }
   0x1   :  { %12 = vsyncpa [#allocation6], 0  ;;  %s30_s23 = sshll.u32 %s429_s1, 4  ;;  %s31_s23 = int_to_ptr.hbm [resolvable:$true] %s30_s23 }
   0x2   :  { %13 = vsyncpa [#allocation4], 0  ;;  %s366_s24 = smov [#allocation5]   ;;  %s19_s28 = sshll.u32 %s428_s0, 4  ;;  %s20_s28 = int_to_ptr.hbm [resolvable:$true] %s19_s28 }
   0x3   :  { %s32_s25 = sshll.u32 %s366_s24, 4  ;;  %s367_s29 = smov [#allocation2]   ;;  %s33_s25 = int_to_ptr.vmem [resolvable:$true] %s32_s25 }
   0x4   :  { %35 = dma.hbm_to_vmem [thread:$0]  %s31_s23, 64, %s33_s25, [#allocation6]  }
   0x5   :  { %s21_s30 = sshll.u32 %s367_s29, 4  ;;  %s42_s9 = sshll.u32 %s431_s3, 4  ;;  %s22_s30 = int_to_ptr.vmem [resolvable:$true] %s21_s30  ;;  %s43_s9 = int_to_ptr.hbm [resolvable:$true] %s42_s9 }
   0x6   :  { %24 = dma.hbm_to_vmem [thread:$0]  %s20_s28, 128, %s22_s30, [#allocation3]  }
   0x7   :  { %s368_s1 = smov [#allocation7]   ;;  %s369_s11 = smov 64  }
   0x8   :  { %s44_s10 = sshll.u32 %s368_s1, 4  ;;  %s370_s12 = smov 4   ;;  %s45_s10 = int_to_ptr.vmem [resolvable:$true] %s44_s10 }
   0x9   :  { %50 = dma.hbm_to_vmem [thread:$0]  %s43_s9, 1024, %s45_s10, [#allocation6], %s369_s11, %s369_s11, %s370_s12  }
   0xa   :  { %360 = dma.done.wait [#allocation3], 128  }
   0xb   :  { %361 = vsyncadd [#allocation3], 4294967168 }
   0xc   :  { %362 = dma.done.wait [#allocation6], 1088  }
   0xd   :  { %363 = vsyncadd [#allocation6], 4294966208  ;;  %vm79_vm0 = vcmask 1043456   ;;  %v70_v0 = vld [vmem:[#allocation5] sm:$0xf]  ;;  %v68_v1 = vld [vmem:[#allocation2] sm:$0xff] }
   0xe   :  { %v255_v2 = vld [vmem:[#allocation7 + $0x38] sm:$0xff]  ;;  %v81_v3 = vsel %vm79_vm0, %v70_v0, 0  ;;  %v69_v4 = vpack.c.bf16 %v68_v1, %v68_v1  ;;  %vm75_vm1 = vcmask 64512   ;;  %v254_v5 = vld [vmem:[#allocation7 + $0x30] sm:$0xff]  ;;  %v253_v6 = vld [vmem:[#allocation7 + $0x28] sm:$0xff]  ;;  %s204_s20 = sshll.u32 %s434_s6, 4  ;;  %s205_s20 = int_to_ptr.hbm [resolvable:$true] %s204_s20 }
   0xf   :  { %90 = vmatpush.bf16.msra.mxu0 %v81_v3  ;;  %166 = vmatpush.bf16.msra.mxu1 %v255_v2  ;;  %v252_v7 = vld [vmem:[#allocation7 + $0x20] sm:$0xff]  ;;  %v251_v8 = vld [vmem:[#allocation7 + $0x18] sm:$0xff]  ;;  %v250_v9 = vld [vmem:[#allocation7 + $0x10] sm:$0xff]  ;;  %vm195_vm2 = vcmask 57344  }
  0x10   :  { %v249_v10 = vld [vmem:[#allocation7 + $0x8] sm:$0xff]  ;;  %v248_v11 = vld [vmem:[#allocation7] sm:$0xff]  ;;  %v262_v12 = vld [vmem:[%s430_s2] ss:$0 sm:$0xff]  ;;  %s371_s2 = smov [#allocation8]  }
  0x11   :  { %v263_v18 = vld [vmem:[%s432_s4] ss:$0 sm:$0xff]  ;;  %s202_s17 = sshll.u32 %s371_s2, 4  ;;  %s203_s17 = int_to_ptr.vmem [resolvable:$true] %s202_s17 }
  0x12   :  { %215 = vmatmul.msk.bf16.vlgmr.msra.gmra.mxu0 %vm75_vm1, %v69_v4  ;;  %v181_v24 = vld [vmem:[%s433_s5] sm:$0x1] }
  0x13   :  { %167 = vmatpush.bf16.msra.mxu1 %v254_v5 }
  0x17   :  { %168 = vmatpush.bf16.msra.mxu1 %v253_v6 }
  0x1b   :  { %169 = vmatpush.bf16.msra.mxu1 %v252_v7 }
  0x1f   :  { %170 = vmatpush.bf16.msra.mxu1 %v251_v8 }
  0x23   :  { %171 = vmatpush.bf16.msra.mxu1 %v250_v9 }
  0x27   :  { %172 = vmatpush.bf16.msra.mxu1 %v249_v10 }
  0x2b   :  { %173 = vmatpush.bf16.msra.mxu1 %v248_v11 }
  0x8f   :  { %v92_v13 = vpop.f32.mrf.mxu0 }
  0x90   :  { %v93_v14 = vadd.f32 %v262_v12, %v92_v13 }
  0x92   :  { %v96_v15 = vmax.f32 %v93_v14, 0.0 }
  0x94   :  { %v97_v16 = vpack.c.bf16 %v96_v15, %v96_v15 }
  0x96   :  { %174 = vmatmul.bf16.vlgmr.msra.gmra.mxu1 %v97_v16 }
  0x97   :  { %v94_v17 = vpop.f32.mrf.mxu0 }
 0x113   :  { %v175_v19 = vpop.f32.mrf.mxu1 }
 0x114   :  { %v176_v20 = vadd.f32 %v263_v18, %v175_v19 }
 0x116   :  { %v179_v21 = vmax.f32 %v176_v20, 0.0 }
 0x118   :  { %v180_v22 = vpack.c.bf16 %v179_v21, %v179_v21 }
 0x11a   :  { %189 = vmatpush.bf16.xpose.msra.mxu2 %v180_v22 }
 0x11b   :  { %v177_v23 = vpop.f32.mrf.mxu1 }
 0x121   :  { %190 = vmatmul.bf16.vlgmr.msra.gmra.mxu2 %v181_v24 }
 0x1a4   :  { %v191_v25 = vpop.f32.mrf.mxu2 }
 0x1a5   :  { %196 = vst.msk [vmem:[#allocation8] sm:$0x1] %vm195_vm2, %v191_v25 }
 0x1a6   :  { %207 = dma.vmem_to_hbm [thread:$0]  %s203_s17, 16, %s205_s20, [#allocation4]  }
 0x1ac   :  { %v193_v26 = vpop.f32.mrf.mxu2 }
 0x1ad   :  { %364 = dma.done.wait [#allocation4], 16  }
 0x1ae   :  { %365 = vsyncadd [#allocation4], 4294967280 }
 0x1af   :  { %212 = vsyncpa [#allocation3], 1 }
 0x1b0   :  { %213 = vsyncpa [#allocation6], 1 }
 0x1b1   :  { %214 = vsyncpa [#allocation4], 1 }

</bundles_post_ra>
